<compile_context>
chip_gen: v6e
topology: v6e:2x2x1
jax: 0.10.0
libtpu: 0.0.40
codegen_flags: <defaults>
</compile_context>

<pallas_src>
import functools

import jax
import jax.numpy as jnp
from jax import lax
from jax.experimental import pallas as pl
from jax.experimental.pallas import tpu as pltpu

EPS = 1e-5            # nn.InstanceNorm2d default eps
NHIDDEN = 128         # SPADE mlp hidden width (fixed in the PyTorch module)
_TAPS = tuple((dy, dx) for dy in (-1, 0, 1) for dx in (-1, 0, 1))  # tap 4 = center


def _round_up(n, m):
    return (n + m - 1) // m * m


def _detect_roll_convention():
    """Probe pltpu.roll's sign convention once (tiny eager pallas_call).

    Returns True if pltpu.roll matches np.roll (positive shift moves elements
    toward higher indices).  The fused kernel is parameterized on this so it
    never depends on an under-documented sign convention."""
    def k(x_ref, o_ref):
        o_ref[...] = pltpu.roll(x_ref[...], 1, 1)
    x = jnp.tile(jnp.arange(128, dtype=jnp.float32)[None, :], (8, 1))
    r = pl.pallas_call(k, out_shape=jax.ShapeDtypeStruct((8, 128), jnp.float32))(x)
    return bool(r[0, 0] == 127.0)


# ----------------------------------------------------------------------------
# The fused kernel: one grid step == one batch sample
# ----------------------------------------------------------------------------
def _spade_resblock_kernel(x_ref, seg_ref, masks_ref, wsh_ref, wgbA_ref,
                           wgb1_ref, wconv_ref, bias_ref, out_ref, *,
                           H, W, fin, fmid, fout, learned_shortcut,
                           bias_offs, roll_forward):
    f32 = jnp.float32
    bf16 = jnp.bfloat16
    P = H * W
    nh = NHIDDEN
    n_spade = 3 if learned_shortcut else 2

    x = x_ref[0]                                   # (fin, P) f32
    seg = seg_ref[0]                               # (cs,  P) f32
    m_all = masks_ref[...]                         # (9,   P) f32, loaded once
    masks = [m_all[t:t + 1, :] for t in range(9)]  # (1, P) each
    bias = bias_ref[...]                           # (B,   1) f32
    o_sh, o_gbA, o_gb1, o_b0, o_b1 = bias_offs

    def tap_roll(v, t):
        """result[:, p] = v[:, (p + s_t) mod P]  (single XLU lane-rotate)."""
        dy, dx = _TAPS[t]
        s = dy * W + dx
        if s == 0:
            return v
        amt = (-s) % P if roll_forward else s % P
        return pltpu.roll(v, amt, 1)

    def im2col9(v):
        """(c, P) -> (9c, P): per-tap rolled + boundary-masked copies."""
        cols = []
        for t in range(9):
            r = tap_roll(v, t)
            if t != 4:                 # center tap is always in-bounds
                r = r * masks[t]
            cols.append(r)
        return jnp.concatenate(cols, axis=0)

    def tap_sum(part, c):
        """3x3 conv from per-tap partials; part rows [t*c:(t+1)*c] = W_t @ rhs."""
        out = None
        for t in range(9):
            r = tap_roll(part[t * c:(t + 1) * c, :], t)
            if t != 4:
                r = r * masks[t]
            out = r if out is None else out + r
        return out

    def instance_norm(v):
        m = jnp.mean(v, axis=1, keepdims=True)
        c = v - m
        var = jnp.mean(c * c, axis=1, keepdims=True)   # two-pass, var >= 0
        return c * lax.rsqrt(var + EPS)

    def leaky(v):
        return jnp.maximum(v, 0.2 * v)                 # leaky_relu(0.2)

    # --- all SPADE mlp_shared 3x3 convs: ONE bf16 im2col matmul + ReLU ------
    seg_col = im2col9(seg).astype(bf16)                          # (9*cs, P)
    actv = jnp.dot(wsh_ref[...], seg_col, preferred_element_type=f32)
    actv = jnp.maximum(actv + bias[o_sh:o_sh + n_spade * nh], 0.0)
    actv = actv.astype(bf16)                                     # (n_spade*128, P)

    x_norm = instance_norm(x)              # shared by norm_0 and norm_s

    # --- gamma/beta for norm_0 (+ norm_s fused block-diagonally) ------------
    if learned_shortcut:
        cA = 4 * fin                                   # [g0, b0, gs, bs]
        rhsA = actv[0:2 * nh, :]                       # [actv_0; actv_s]
        actv_1 = actv[2 * nh:3 * nh, :]
    else:
        cA = 2 * fin                                   # [g0, b0]
        rhsA = actv[0:nh, :]
        actv_1 = actv[nh:2 * nh, :]
    partA = jnp.dot(wgbA_ref[...], rhsA, preferred_element_type=f32)
    gbA = tap_sum(partA, cA) + bias[o_gbA:o_gbA + cA]
    g0, bt0 = gbA[0:fin], gbA[fin:2 * fin]

    wconv = wconv_ref[...]                             # (fmid+fout[+fout], .)

    # --- main path: conv_0(leaky(SPADE_0(x))) --------------------------------
    h0 = leaky(x_norm * (1.0 + g0) + bt0)              # (fin, P)
    col0 = im2col9(h0).astype(bf16)                    # (9*fin, P)
    w0 = wconv[0:fmid, 0:9 * fin]
    d = jnp.dot(w0, col0, preferred_element_type=f32) + bias[o_b0:o_b0 + fmid]

    # --- SPADE_1 + conv_1 -----------------------------------------------------
    part1 = jnp.dot(wgb1_ref[...], actv_1, preferred_element_type=f32)
    gb1 = tap_sum(part1, 2 * fmid) + bias[o_gb1:o_gb1 + 2 * fmid]
    g1, bt1 = gb1[0:fmid], gb1[fmid:2 * fmid]
    h1 = leaky(instance_norm(d) * (1.0 + g1) + bt1)    # (fmid, P)
    col1 = im2col9(h1).astype(bf16)                    # (9*fmid, P)
    w1 = wconv[fmid:fmid + fout, 0:9 * fmid]
    dx = jnp.dot(w1, col1, preferred_element_type=f32) + bias[o_b1:o_b1 + fout]

    # --- shortcut (1x1 conv, no bias) + residual add as epilogue -------------
    if learned_shortcut:
        gs, bts = gbA[2 * fin:3 * fin], gbA[3 * fin:4 * fin]
        xs = (x_norm * (1.0 + gs) + bts).astype(bf16)
        ws = wconv[fmid + fout:fmid + 2 * fout, 0:fin]
        x_s = jnp.dot(ws, xs, preferred_element_type=f32)
    else:
        x_s = x

    out_ref[0] = (x_s + dx).astype(out_ref.dtype)


# ----------------------------------------------------------------------------
# Weight packing (PyTorch layouts -> packed bf16 kernel operands)
# ----------------------------------------------------------------------------
def _w3x3_to_im2col(w):
    """(Cout, Cin, 3, 3) -> (Cout, 9*Cin); column index = tap*Cin + ci."""
    cout, cin = w.shape[0], w.shape[1]
    return jnp.transpose(w, (0, 2, 3, 1)).reshape(cout, 9 * cin)


def _w3x3_to_tapstack(w):
    """(Cout, Cin, 3, 3) -> (9*Cout, Cin); row index = tap*Cout + co."""
    cout, cin = w.shape[0], w.shape[1]
    return jnp.transpose(w, (2, 3, 0, 1)).reshape(9 * cout, cin)


def _pack_params(params, fin, fmid, fout, learned_shortcut):
    bf16 = jnp.bfloat16
    norms = (["norm_0", "norm_s", "norm_1"] if learned_shortcut
             else ["norm_0", "norm_1"])

    # all mlp_shared convs stacked: (n_spade*128, 9*cs)
    wsh = jnp.concatenate(
        [_w3x3_to_im2col(params[n]["w_shared"]) for n in norms], axis=0)

    def gb_tapstack(n):
        p = params[n]
        w = jnp.concatenate([p["w_gamma"], p["w_beta"]], axis=0)  # (2c,128,3,3)
        return _w3x3_to_tapstack(w)        # per-tap rows: [gamma(c), beta(c)]

    if learned_shortcut:
        # block-diagonal fusion of norm_0 + norm_s gamma/beta:
        # per-tap rows = [g0,b0 | gs,bs], columns = [actv_0 | actv_s].
        t0 = gb_tapstack("norm_0").reshape(9, 2 * fin, NHIDDEN)
        ts = gb_tapstack("norm_s").reshape(9, 2 * fin, NHIDDEN)
        z = jnp.zeros_like(t0)
        wgbA = jnp.concatenate(
            [jnp.concatenate([t0, z], axis=2),
             jnp.concatenate([z, ts], axis=2)], axis=1
        ).reshape(9 * 4 * fin, 2 * NHIDDEN)
        bgbA = jnp.concatenate(
            [params["norm_0"]["b_gamma"], params["norm_0"]["b_beta"],
             params["norm_s"]["b_gamma"], params["norm_s"]["b_beta"]])
    else:
        wgbA = gb_tapstack("norm_0")
        bgbA = jnp.concatenate(
            [params["norm_0"]["b_gamma"], params["norm_0"]["b_beta"]])

    wgb1 = gb_tapstack("norm_1")
    bgb1 = jnp.concatenate(
        [params["norm_1"]["b_gamma"], params["norm_1"]["b_beta"]])

    # conv_0 / conv_1 (im2col layout) and the 1x1 conv_s packed as one block
    blocks = [_w3x3_to_im2col(params["w0"]), _w3x3_to_im2col(params["w1"])]
    if learned_shortcut:
        blocks.append(params["w_s"][:, :, 0, 0])                 # (fout, fin)
    wcol = max(int(b.shape[1]) for b in blocks)
    wconv = jnp.concatenate(
        [jnp.pad(b, ((0, 0), (0, wcol - int(b.shape[1])))) for b in blocks],
        axis=0)

    # all biases packed into ONE column vector; segments 8-sublane aligned
    segs = [jnp.concatenate([params[n]["b_shared"] for n in norms]),
            bgbA, bgb1, params["b0"], params["b1"]]
    offs, pieces, off = [], [], 0
    for seg in segs:
        n = int(seg.shape[0])
        offs.append(off)
        npad = _round_up(n, 8)
        pieces.append(jnp.pad(seg, (0, npad - n)))
        off += npad
    bias = jnp.concatenate(pieces).reshape(-1, 1).astype(jnp.float32)

    return {"wsh": wsh.astype(bf16), "wgbA": wgbA.astype(bf16),
            "wgb1": wgb1.astype(bf16), "wconv": wconv.astype(bf16),
            "bias": bias, "bias_offs": tuple(offs)}


# ----------------------------------------------------------------------------
# Forward wrapper (NCHW in / NCHW out)
# ----------------------------------------------------------------------------
def nearest_resize_nchw(seg, H, W):
    """F.interpolate(mode='nearest') semantics: src = floor(dst * in/out)."""
    _, _, h, w = seg.shape
    if (h, w) == (H, W):
        return seg
    iy = (jnp.arange(H) * h) // H
    ix = (jnp.arange(W) * w) // W
    return seg[:, :, iy, :][:, :, :, ix]


def _tap_masks(H, W):
    """(9, H*W) f32: mask[t, p] = 1 iff neighbour (y+dy_t, x+dx_t) is in-bounds."""
    pos = jnp.arange(H * W, dtype=jnp.int32)
    py, px = pos // W, pos % W
    rows = []
    for dy, dx in _TAPS:
        rows.append((py + dy >= 0) & (py + dy < H) &
                    (px + dx >= 0) & (px + dx < W))
    return jnp.stack(rows).astype(jnp.float32)


def spade_resnet_block_forward(x_nchw, seg_nchw, params, fin, fout,
                               roll_forward=True):
    """Fused SPADEResnetBlock.forward.  Inputs/outputs are NCHW float32."""
    N, _, H, W = x_nchw.shape
    P = H * W
    fmid = min(fin, fout)
    learned_shortcut = fin != fout

    seg_r = nearest_resize_nchw(seg_nchw, H, W)
    cs = seg_r.shape[1]
    seg_flat = seg_r.reshape(N, cs, P).astype(jnp.float32)
    x_flat = x_nchw.reshape(N, fin, P)
    masks = _tap_masks(H, W)                                     # (9, P)

    pk = _pack_params(params, fin, fmid, fout, learned_shortcut)
    operands = [x_flat, seg_flat, masks, pk["wsh"], pk["wgbA"], pk["wgb1"],
                pk["wconv"], pk["bias"]]

    def _const_spec(a):
        # full-array block, identical for every grid step (weights/masks/bias)
        return pl.BlockSpec(a.shape, lambda n, _nd=a.ndim: (0,) * _nd)

    in_specs = ([pl.BlockSpec((1, fin, P), lambda n: (n, 0, 0)),
                 pl.BlockSpec((1, cs, P), lambda n: (n, 0, 0))]
                + [_const_spec(a) for a in operands[2:]])

    kern = functools.partial(
        _spade_resblock_kernel, H=H, W=W, fin=fin, fmid=fmid, fout=fout,
        learned_shortcut=learned_shortcut, bias_offs=pk["bias_offs"],
        roll_forward=roll_forward)

    out_flat = pl.pallas_call(
        kern,
        out_shape=jax.ShapeDtypeStruct((N, fout, P), x_nchw.dtype),
        grid_spec=pltpu.PrefetchScalarGridSpec(
            num_scalar_prefetch=0,
            grid=(N,),
            in_specs=in_specs,
            out_specs=pl.BlockSpec((1, fout, P), lambda n: (n, 0, 0)),
        ),
        compiler_params=pltpu.CompilerParams(
            dimension_semantics=("parallel",),      # megacore: split the batch
            vmem_limit_bytes=32 * 1024 * 1024),
    )(*operands)
    return out_flat.reshape(N, fout, H, W)


# ----------------------------------------------------------------------------
# Pure-JAX/XLA reference (faithful f32 re-implementation of the module)
# ----------------------------------------------------------------------------
def _conv_ref(x, w, b=None, pad=1):
    out = lax.conv_general_dilated(
        x, w, window_strides=(1, 1), padding=[(pad, pad), (pad, pad)],
        dimension_numbers=("NCHW", "OIHW", "NCHW"),
        precision=lax.Precision.HIGHEST)
    if b is not None:
        out = out + b.reshape(1, -1, 1, 1)
    return out


def _instance_norm_ref(x):
    m = jnp.mean(x, axis=(2, 3), keepdims=True)
    v = jnp.mean(jnp.square(x - m), axis=(2, 3), keepdims=True)
    return (x - m) / jnp.sqrt(v + EPS)


def _spade_ref(x, seg_r, p):
    actv = jax.nn.relu(_conv_ref(seg_r, p["w_shared"], p["b_shared"]))
    gamma = _conv_ref(actv, p["w_gamma"], p["b_gamma"])
    beta = _conv_ref(actv, p["w_beta"], p["b_beta"])
    return _instance_norm_ref(x) * (1.0 + gamma) + beta


def spade_resnet_block_ref(x, seg, params, fin, fout):
    H, W = x.shape[2], x.shape[3]
    seg_r = nearest_resize_nchw(seg, H, W)
    if fin != fout:
        x_s = _conv_ref(_spade_ref(x, seg_r, params["norm_s"]),
                        params["w_s"], None, pad=0)
    else:
        x_s = x
    act = lambda v: jax.nn.leaky_relu(v, 0.2)
    dx = _conv_ref(act(_spade_ref(x, seg_r, params["norm_0"])),
                   params["w0"], params["b0"])
    dx = _conv_ref(act(_spade_ref(dx, seg_r, params["norm_1"])),
                   params["w1"], params["b1"])
    return x_s + dx


# ----------------------------------------------------------------------------
# Deterministic synthetic parameters (shapes follow the module __init__)
# ----------------------------------------------------------------------------
def _spade_params(key, norm_nc, label_nc):
    k = jax.random.split(key, 6)
    s = 0.1
    return {
        "w_shared": s * jax.random.normal(k[0], (NHIDDEN, label_nc, 3, 3), jnp.float32),
        "b_shared": s * jax.random.normal(k[1], (NHIDDEN,), jnp.float32),
        "w_gamma":  s * jax.random.normal(k[2], (norm_nc, NHIDDEN, 3, 3), jnp.float32),
        "b_gamma":  s * jax.random.normal(k[3], (norm_nc,), jnp.float32),
        "w_beta":   s * jax.random.normal(k[4], (norm_nc, NHIDDEN, 3, 3), jnp.float32),
        "b_beta":   s * jax.random.normal(k[5], (norm_nc,), jnp.float32),
    }


def init_params(key, fin, fout, semantic_nc):
    fmid = min(fin, fout)
    k = jax.random.split(key, 8)
    s = 0.1
    params = {
        "norm_0": _spade_params(k[0], fin, semantic_nc),
        "norm_1": _spade_params(k[1], fmid, semantic_nc),
        "w0": s * jax.random.normal(k[2], (fmid, fin, 3, 3), jnp.float32),
        "b0": s * jax.random.normal(k[3], (fmid,), jnp.float32),
        "w1": s * jax.random.normal(k[4], (fout, fmid, 3, 3), jnp.float32),
        "b1": s * jax.random.normal(k[5], (fout,), jnp.float32),
    }
    if fin != fout:
        params["norm_s"] = _spade_params(k[6], fin, semantic_nc)
        params["w_s"] = s * jax.random.normal(k[7], (fout, fin, 1, 1), jnp.float32)
    return params


# ----------------------------------------------------------------------------
# Main
# ----------------------------------------------------------------------------
if __name__ == "__main__":
    fin, fout = 4, 8                 # learned-shortcut path exercised
    label_nc = 3
    contain_dontcare_label = True
    semantic_nc = label_nc + (1 if contain_dontcare_label else 0)   # = 4
    N, H, W = 2, 16, 16

    key = jax.random.PRNGKey(0)
    kx, kseg, kp = jax.random.split(key, 3)
    x = jax.random.normal(kx, (N, fin, H, W), jnp.float32)           # NCHW
    seg = jax.random.normal(kseg, (N, semantic_nc, H // 2, W // 2),  # NCHW
                            jnp.float32)
    params = init_params(kp, fin, fout, semantic_nc)

    roll_fwd = _detect_roll_convention()

    fwd = jax.jit(spade_resnet_block_forward, static_argnums=(3, 4, 5))
    out = jax.block_until_ready(fwd(x, seg, params, fin, fout, roll_fwd))

    assert out.shape == (N, fout, H, W), out.shape
    assert bool(jnp.all(jnp.isfinite(out)))

    # Cross-check the fused kernel against a faithful f32 XLA reference.
    ref = jax.block_until_ready(
        spade_resnet_block_ref(x, seg, params, fin, fout))
    err = float(jnp.max(jnp.abs(out - ref)))
    scale = float(jnp.max(jnp.abs(ref)))
    # bf16 MXU operands (f32 accumulation): allow ~4% of the output range,
    # still several times below the error any tap/shift/mask/layout bug gives.
    assert err <= 4e-2 * max(1.0, scale), f"max abs err {err} (ref scale {scale})"

    print("KERNEL_OK")
</pallas_src>

<mosaic_0001>
module attributes {stable_mosaic.version = 11 : i64} {
  func.func @k(%arg0: memref<8x128xf32, #tpu.memory_space<vmem>>, %arg1: memref<8x128xf32, #tpu.memory_space<vmem>>) attributes {dimension_semantics = [], scalar_prefetch = 0 : i64, scratch_operands = 0 : i64, tpu.core_type = #tpu.core_type<tc>} {
    %c0 = arith.constant 0 : index
    %c0_0 = arith.constant 0 : index
    %0 = vector.load %arg0[%c0, %c0_0] : memref<8x128xf32, #tpu.memory_space<vmem>>, vector<8x128xf32>
    %c1_i32 = arith.constant 1 : i32
    %1 = tpu.dynamic_rotate %0 by %c1_i32 dim 1 : vector<8x128xf32>, i32 -> vector<8x128xf32>
    %c0_1 = arith.constant 0 : index
    %c0_2 = arith.constant 0 : index
    %2 = vector.load %arg1[%c0_1, %c0_2] : memref<8x128xf32, #tpu.memory_space<vmem>>, vector<8x128xf32>
    tpu.vector_store %arg1[%c0_1, %c0_2], %1 {strides = array<i32>} : memref<8x128xf32, #tpu.memory_space<vmem>>, vector<8x128xf32>,
    return
  }
}

</mosaic_0001>

<bundles_post_ra>
// kernel: tpu_custom_call.1
= control target key start
LH: loop header
LB: loop body
LE: loop exit
PB: predicated region body
PF: predicated region fallthrough
CT: control target
= control target key end

     0   :  { %6 = vsyncpa [#allocation3], 0  ;;  %s106_s0 = inlined_call_operand.hbm [shape: f32[8,128], index: 0, kind: input, shape index: {}]   ;;  %s107_s1 = inlined_call_operand.hbm [shape: f32[8,128], index: 1, kind: output, shape index: {}]  }
   0x1   :  { %7 = vsyncpa [#allocation4], 0  ;;  %s87_s6 = smov [#allocation2]  }
   0x2   :  { %s14_s7 = sshll.u32 %s87_s6, 4  ;;  %s15_s7 = int_to_ptr.vmem [resolvable:$true] %s14_s7 }
   0x3   :  { %s51_s8 = scalar_lea.vmem %s15_s7, 128  ;;  %p56_p1 = scmp.lt.s32.totalorder %s15_s7, %s15_s7 }
   0x4   :  { %p52_p0 = scmp.ne.s32.totalorder %s15_s7, %s51_s8  ;;  %p57_p2 = scmp.lt.s32.totalorder %s51_s8, %s51_s8 }
   0x6   :  { %p58_p3 = por %p57_p2, %p56_p1 }
   0x8   :  { %p59_p4 = pnand %p58_p3, %p52_p0 }
   0xa   :  { %62 = shalt.err (!%p59_p4)
}
   0xb   :  { %17 = dma.hbm_to_vmem [thread:$0]  %s106_s0, 128, %s15_s7, [#allocation3]  }
   0xc   :  { %83 = dma.done.wait [#allocation3], 128  }
   0xd   :  { %84 = vsyncadd [#allocation3], 4294967168  ;;  %v21_v0 = vld [vmem:[#allocation2] sm:$0xff]  ;;  %s88_s11 = smov 1   ;;  %s89_s12 = smov [#allocation5]  }
   0xe   :  { %22 = vrot.lane.b32.xlu0 %v21_v0, %s88_s11  ;;  %s31_s13 = sshll.u32 %s89_s12, 4  ;;  %s32_s13 = int_to_ptr.vmem [resolvable:$true] %s31_s13 }
   0xf   :  { %s63_s14 = scalar_lea.vmem %s32_s13, 128  ;;  %p68_p6 = scmp.lt.s32.totalorder %s32_s13, %s32_s13 }
  0x10   :  { %p64_p5 = scmp.ne.s32.totalorder %s32_s13, %s63_s14  ;;  %p69_p7 = scmp.lt.s32.totalorder %s63_s14, %s63_s14 }
  0x12   :  { %p70_p8 = por %p69_p7, %p68_p6 }
  0x14   :  { %p71_p9 = pnand %p70_p8, %p64_p5 }
  0x80   :  { %v23_v1 = vpop.permute.xlu0 %22 }
  0x81   :  { %24 = vst [vmem:[#allocation5] sm:$0xff] %v23_v1 }
  0x82   :  { %74 = shalt.err (!%p71_p9)
}
  0x83   :  { %34 = dma.vmem_to_hbm [thread:$0]  %s32_s13, 128, %s107_s1, [#allocation4]  }
  0x84   :  { %85 = dma.done.wait [#allocation4], 128  }
  0x85   :  { %86 = vsyncadd [#allocation4], 4294967168 }
  0x86   :  { %38 = vsyncpa [#allocation3], 1 }
  0x87   :  { %39 = vsyncpa [#allocation4], 1 }

</bundles_post_ra>
